<compile_context>
chip_gen: v7x
topology: tpu7x:2x2x1
jax: 0.10.0
libtpu: 0.0.40
codegen_flags: <defaults>
</compile_context>

<pallas_src>
import jax
import jax.numpy as jnp
from jax.experimental import pallas as pl
from jax.experimental.pallas import tpu as pltpu


# VMEM sizing: 64 MiB equals v7x's per-TensorCore physical VMEM and is well
# below v5e/v6e's 128 MiB, so it is a safe explicit limit on every generation
# while being far above the 16/32 MiB scoped defaults.  Tiles are sized against
# a slightly smaller budget to leave headroom for compiler temporaries.
_VMEM_LIMIT_BYTES = 64 << 20
_VMEM_TILE_BUDGET = 50 << 20
_RESIDENT_W_BYTES = 16 << 20   # cap for the VMEM-resident weight row (per review)
_MAX_TM = 2048                 # rows per streamed x/out tile


def _round_up(x, m):
    return ((x + m - 1) // m) * m


def _pick_tile(full, cap, align):
    """Largest multiple of `align` that divides `full` and is <= cap; falls
    back to the full dimension (always a legal block size)."""
    if full <= cap:
        return full
    t = (cap // align) * align
    while t >= align:
        if full % t == 0:
            return t
        t -= align
    return full


# ---------------------------------------------------------------------------
# Fast path: whole gathered weight row resident in VMEM, grid = (B, S//tm).
# No accumulator scratch, no init/finalize branches.
# ---------------------------------------------------------------------------
def _lookup_linear_kernel_fused(obj_idx_ref,  # scalar-prefetch (SMEM), drives index_maps
                                x_ref,        # (1, tm, Cin)
                                w_ref,        # (1, Cin, Cout_pad)  gathered, resident
                                b_ref,        # (1, 1,  Cout_pad)   gathered
                                o_ref):       # (1, tm, Cout_pad)
    acc = jnp.dot(x_ref[0], w_ref[0], preferred_element_type=jnp.float32)
    o_ref[0] = (acc + b_ref[0].astype(jnp.float32)).astype(o_ref.dtype)


# ---------------------------------------------------------------------------
# Fallback path: K/N-tiled with an f32 VMEM accumulator (K innermost), used
# only when the weight row is too large to keep resident.
# ---------------------------------------------------------------------------
def _lookup_linear_kernel_tiled(obj_idx_ref,
                                x_ref,        # (1, tm, tk)
                                w_ref,        # (1, tk, tn)
                                b_ref,        # (1, 1,  tn)
                                o_ref,        # (1, tm, tn)
                                acc_ref):     # (tm, tn) f32 scratch
    k = pl.program_id(3)

    @pl.when(k == 0)
    def _init():
        acc_ref[...] = jnp.zeros_like(acc_ref)

    acc_ref[...] += jnp.dot(x_ref[0], w_ref[0], preferred_element_type=jnp.float32)

    @pl.when(k == pl.num_programs(3) - 1)
    def _finalize():
        o_ref[0] = (acc_ref[...] + b_ref[0].astype(jnp.float32)).astype(o_ref.dtype)


def lookup_linear_forward(obj_idx, x, w_table, b_table, out_ch,
                          *, sort_by_obj=False, return_padded=False,
                          out_dtype=None):
    """obj_idx: (B,) int32
       x:       (B, S, in_ch)
       w_table: (num_objects, in_ch, out_ch_pad)   pre-transposed, lane-padded
       b_table: (num_objects, 1, out_ch_pad)
       returns  (B, S, out_ch)   (or (B, S, out_ch_pad) if return_padded)"""
    B, S, Cin = x.shape
    num_objects, Cin_w, Cout_pad = w_table.shape
    assert Cin_w == Cin
    obj_idx = jnp.asarray(obj_idx, jnp.int32)

    out_dtype = x.dtype if out_dtype is None else out_dtype
    # bf16 path: if the table was prepared in bf16, cast the activations too so
    # the MXU runs the native bf16 path (mixed f32 x bf16 silently promotes).
    if w_table.dtype != x.dtype:
        x = x.astype(w_table.dtype)

    # Optional: group equal obj_idx so consecutive batches hit an unchanged
    # gathered-W block index (DMA skipped entirely).  Worth it when many batch
    # entries share one scene and the weight row is large relative to x.
    do_sort = bool(sort_by_obj) and B > 1
    if do_sort:
        perm = jnp.argsort(obj_idx)          # stable by default
        inv_perm = jnp.argsort(perm)
        obj_idx = obj_idx[perm]
        x = x[perm]

    x_bytes = jnp.dtype(x.dtype).itemsize
    w_bytes = jnp.dtype(w_table.dtype).itemsize
    b_bytes = jnp.dtype(b_table.dtype).itemsize
    o_bytes = jnp.dtype(out_dtype).itemsize
    sublane = 16 if x_bytes == 2 else 8

    # ---------------- fast path viability + tm sizing ----------------
    w_row_bytes = Cin * Cout_pad * w_bytes
    use_fast = w_row_bytes <= _RESIDENT_W_BYTES
    tm = None
    if use_fast:
        bias_bytes = 2 * Cout_pad * b_bytes
        per_row = 3 * Cin * x_bytes + 2 * Cout_pad * o_bytes   # x triple-, out double-buffered
        rows_left = (_VMEM_TILE_BUDGET - 2 * w_row_bytes - bias_bytes) // per_row
        if rows_left < 1:
            use_fast = False
        else:
            tm = _pick_tile(S, min(int(rows_left), _MAX_TM), sublane)
            need = 2 * w_row_bytes + bias_bytes + tm * per_row
            if need > _VMEM_TILE_BUDGET:
                use_fast = False

    if use_fast:
        Mt = S // tm
        x_spec_kwargs = {}
        if Mt >= 3:
            # deepen x streaming when per-tile compute is short (small Cin)
            x_spec_kwargs = dict(pipeline_mode=pl.Buffered(3))
        x_spec = pl.BlockSpec((1, tm, Cin), lambda b, m, idx: (b, m, 0),
                              **x_spec_kwargs)

        cost = pl.CostEstimate(
            flops=2 * B * S * Cin * Cout_pad,
            transcendentals=0,
            bytes_accessed=(B * S * Cin * x_bytes
                            + B * Cin * Cout_pad * w_bytes
                            + B * Cout_pad * b_bytes
                            + B * S * Cout_pad * o_bytes))

        out_full = pl.pallas_call(
            _lookup_linear_kernel_fused,
            out_shape=jax.ShapeDtypeStruct((B, S, Cout_pad), out_dtype),
            grid_spec=pltpu.PrefetchScalarGridSpec(
                num_scalar_prefetch=1,
                grid=(B, Mt),
                in_specs=[
                    # streamed activations
                    x_spec,
                    # gathered weight row: index constant across the M sweep
                    pl.BlockSpec((1, Cin, Cout_pad),
                                 lambda b, m, idx: (idx[b], 0, 0)),
                    # gathered bias row
                    pl.BlockSpec((1, 1, Cout_pad),
                                 lambda b, m, idx: (idx[b], 0, 0)),
                ],
                out_specs=pl.BlockSpec((1, tm, Cout_pad),
                                       lambda b, m, idx: (b, m, 0)),
            ),
            compiler_params=pltpu.CompilerParams(
                dimension_semantics=("parallel", "parallel"),
                vmem_limit_bytes=_VMEM_LIMIT_BYTES),
            cost_estimate=cost,
        )(obj_idx, x, w_table, b_table)
    else:
        # ---------------- K/N-tiled fallback (huge hyper-layers) ----------------
        tm = _pick_tile(S, 512, sublane)
        tn = _pick_tile(Cout_pad, 512, 128)
        tk = _pick_tile(Cin, 512, 128)
        grid = (B, S // tm, Cout_pad // tn, Cin // tk)
        out_full = pl.pallas_call(
            _lookup_linear_kernel_tiled,
            out_shape=jax.ShapeDtypeStruct((B, S, Cout_pad), out_dtype),
            grid_spec=pltpu.PrefetchScalarGridSpec(
                num_scalar_prefetch=1,
                grid=grid,
                in_specs=[
                    pl.BlockSpec((1, tm, tk), lambda b, m, n, k, idx: (b, m, k)),
                    pl.BlockSpec((1, tk, tn), lambda b, m, n, k, idx: (idx[b], k, n)),
                    pl.BlockSpec((1, 1, tn), lambda b, m, n, k, idx: (idx[b], 0, n)),
                ],
                out_specs=pl.BlockSpec((1, tm, tn), lambda b, m, n, k, idx: (b, m, n)),
                scratch_shapes=[pltpu.VMEM((tm, tn), jnp.float32)],
            ),
            compiler_params=pltpu.CompilerParams(
                dimension_semantics=("parallel", "parallel", "parallel", "arbitrary"),
                vmem_limit_bytes=_VMEM_LIMIT_BYTES),
        )(obj_idx, x, w_table, b_table)

    if do_sort:
        out_full = out_full[inv_perm]
    if (not return_padded) and Cout_pad != out_ch:
        # NOTE: for best end-to-end perf, keep consumers on the padded layout
        # (return_padded=True) and fuse the slice into the next op.
        out_full = out_full[:, :, :out_ch]
    return out_full


# ---------------------------------------------------------------------------
# LookupLinear parameters (faithful to the PyTorch init) + one-time layout
# preparation for the kernel.
# ---------------------------------------------------------------------------
def init_lookup_linear(key, in_ch, out_ch, num_objects, dtype=jnp.float32):
    """nn.Embedding(num_objects, in_ch*out_ch + out_ch); kaiming_normal_
    (fan_in, relu -> std = sqrt(2/in_ch)) on the weight part, zeros on bias."""
    std = (2.0 / in_ch) ** 0.5
    w_part = std * jax.random.normal(key, (num_objects, out_ch * in_ch), dtype)
    b_part = jnp.zeros((num_objects, out_ch), dtype)
    return jnp.concatenate([w_part, b_part], axis=-1)   # (num_objects, in*out + out)


def prepare_lookup_tables(hypo_table, in_ch, out_ch, param_dtype=None,
                          lane_align=128):
    """One-time host-side layout plumbing (not per-forward work):
      * split embedding rows into weights / biases,
      * transpose weights to (in_ch, out_ch) so the kernel needs no w.T,
      * pad out_ch up to a multiple of `lane_align` (128; use 256 on v6e/v7x
        for full-width MXU passes) so stores/DMAs are lane-dense,
      * optionally cast the weights to bf16 (param_dtype=jnp.bfloat16) to
        halve HBM weight traffic and hit the native bf16 MXU path."""
    num_objects = hypo_table.shape[0]
    w = hypo_table[:, : in_ch * out_ch].reshape(num_objects, out_ch, in_ch)
    b = hypo_table[:, in_ch * out_ch:]
    cout_pad = _round_up(out_ch, lane_align)
    w_t = jnp.swapaxes(w, -1, -2)                                   # (N, in, out)
    w_t = jnp.pad(w_t, ((0, 0), (0, 0), (0, cout_pad - out_ch)))
    b_p = jnp.pad(b, ((0, 0), (0, cout_pad - out_ch))).reshape(num_objects, 1, cout_pad)
    if param_dtype is not None:
        w_t = w_t.astype(param_dtype)
    return w_t, b_p


if __name__ == "__main__":
    in_ch, out_ch, num_objects = 16, 32, 4
    B, S = 2, 8

    key = jax.random.PRNGKey(0)
    k_tab, k_b, k_x, k_x2 = jax.random.split(key, 4)

    # Faithful init (zero biases), then give the biases nonzero "trained"
    # values so the bias-add path is actually exercised numerically.
    hypo_table = init_lookup_linear(k_tab, in_ch, out_ch, num_objects)
    hypo_table = hypo_table.at[:, in_ch * out_ch:].set(
        0.1 * jax.random.normal(k_b, (num_objects, out_ch), jnp.float32))

    obj_idx = jnp.array([3, 1], dtype=jnp.int32)
    x = jax.random.normal(k_x, (B, S, in_ch), jnp.float32)

    # Reference: PyTorch LookupLinear -> BatchLinear semantics (x @ W^T + b).
    hypo = hypo_table[obj_idx]
    w_ref = hypo[:, : in_ch * out_ch].reshape(B, out_ch, in_ch)
    b_ref = hypo[:, in_ch * out_ch:].reshape(B, 1, out_ch)
    ref = jnp.einsum("bsi,boi->bso", x, w_ref) + b_ref

    # 1) f32 fast path (resident W row, grid (B, S//tm)), tight tolerance.
    w_table, b_table = prepare_lookup_tables(hypo_table, in_ch, out_ch)
    out = lookup_linear_forward(obj_idx, x, w_table, b_table, out_ch)
    out = jax.block_until_ready(out)
    assert out.shape == (B, S, out_ch)
    assert jnp.allclose(out, ref, atol=1e-5, rtol=1e-5)

    # 2) bf16 weight/activation path (native bf16 MXU, f32 accumulation) with
    #    batch grouping by obj_idx exercised; relaxed tolerance for bf16 cast.
    w_bf16, b_bf16 = prepare_lookup_tables(hypo_table, in_ch, out_ch,
                                           param_dtype=jnp.bfloat16)
    out_bf16 = lookup_linear_forward(obj_idx, x, w_bf16, b_bf16, out_ch,
                                     sort_by_obj=True)
    out_bf16 = jax.block_until_ready(out_bf16)
    assert out_bf16.shape == (B, S, out_ch)
    assert jnp.allclose(out_bf16.astype(jnp.float32), ref, atol=5e-2, rtol=5e-2)

    # 3) Larger S to exercise M-tiling + Buffered(3) x streaming (still f32).
    S2 = 8192
    x2 = jax.random.normal(k_x2, (B, S2, in_ch), jnp.float32)
    ref2 = jnp.einsum("bsi,boi->bso", x2, w_ref) + b_ref
    out2 = lookup_linear_forward(obj_idx, x2, w_table, b_table, out_ch)
    out2 = jax.block_until_ready(out2)
    assert out2.shape == (B, S2, out_ch)
    assert jnp.allclose(out2, ref2, atol=1e-4, rtol=1e-4)

    print("KERNEL_OK")
</pallas_src>

<mosaic_0001>
module attributes {stable_mosaic.version = 11 : i64} {
  func.func @_lookup_linear_kernel_fused(%arg0: i32, %arg1: i32, %arg2: memref<2xi32, #tpu.memory_space<smem>>, %arg3: memref<1x8x16xf32, #tpu.memory_space<vmem>>, %arg4: memref<1x16x128xf32, #tpu.memory_space<vmem>>, %arg5: memref<1x1x128xf32, #tpu.memory_space<vmem>>, %arg6: memref<1x8x128xf32, #tpu.memory_space<vmem>>) attributes {dimension_semantics = [#tpu.dimension_semantics<parallel>, #tpu.dimension_semantics<parallel>], iteration_bounds = array<i64: 2, 1>, scalar_prefetch = 1 : i64, scratch_operands = 0 : i64, tpu.core_type = #tpu.core_type<tc>, window_params = [{transform_indices = @transform_0, window_bounds = array<i64: 1, 8, 16>}, {transform_indices = @transform_1, window_bounds = array<i64: 1, 16, 128>}, {transform_indices = @transform_2, window_bounds = array<i64: 1, 1, 128>}, {transform_indices = @transform_3, window_bounds = array<i64: 1, 8, 128>}]} {
    %c0 = arith.constant 0 : index
    %c0_0 = arith.constant 0 : index
    %c0_1 = arith.constant 0 : index
    %0 = vector.load %arg3[%c0, %c0_0, %c0_1] : memref<1x8x16xf32, #tpu.memory_space<vmem>>, vector<1x8x16xf32>
    %1 = vector.shape_cast %0 : vector<1x8x16xf32> to vector<8x16xf32>
    %c0_2 = arith.constant 0 : index
    %c0_3 = arith.constant 0 : index
    %c0_4 = arith.constant 0 : index
    %2 = vector.load %arg4[%c0_2, %c0_3, %c0_4] : memref<1x16x128xf32, #tpu.memory_space<vmem>>, vector<1x16x128xf32>
    %3 = vector.shape_cast %2 : vector<1x16x128xf32> to vector<16x128xf32>
    %cst = arith.constant dense<0.000000e+00> : vector<8x128xf32>
    %4 = tpu.matmul %1, %3, %cst {dimension_numbers = #tpu.dot_dimension_numbers<[1], [0], [0], [1], [0, 0, 1, 1], [], []>} : vector<8x16xf32>, vector<16x128xf32>, vector<8x128xf32> -> vector<8x128xf32>
    %c0_5 = arith.constant 0 : index
    %c0_6 = arith.constant 0 : index
    %c0_7 = arith.constant 0 : index
    %5 = vector.load %arg5[%c0_5, %c0_6, %c0_7] : memref<1x1x128xf32, #tpu.memory_space<vmem>>, vector<1x1x128xf32>
    %6 = vector.shape_cast %5 : vector<1x1x128xf32> to vector<1x128xf32>
    %7 = vector.broadcast %6 : vector<1x128xf32> to vector<8x128xf32>
    %8 = arith.addf %4, %7 : vector<8x128xf32>
    %c0_8 = arith.constant 0 : index
    %c0_9 = arith.constant 0 : index
    %c0_10 = arith.constant 0 : index
    %9 = vector.load %arg6[%c0_8, %c0_9, %c0_10] : memref<1x8x128xf32, #tpu.memory_space<vmem>>, vector<1x8x128xf32>
    %10 = vector.shape_cast %9 : vector<1x8x128xf32> to vector<8x128xf32>
    %11 = vector.shape_cast %8 : vector<8x128xf32> to vector<1x8x128xf32>
    tpu.vector_store %arg6[%c0_8, %c0_9, %c0_10], %11 {strides = array<i32>} : memref<1x8x128xf32, #tpu.memory_space<vmem>>, vector<1x8x128xf32>,
    return
  }
  func.func @transform_0(%arg0: i32, %arg1: i32, %arg2: memref<2xi32, #tpu.memory_space<smem>>) -> (i32, i32, i32) {
    %c0_i32 = arith.constant 0 : i32
    %c0_i32_0 = arith.constant 0 : i32
    return %arg0, %arg1, %c0_i32 : i32, i32, i32
  }
  func.func @transform_1(%arg0: i32, %arg1: i32, %arg2: memref<2xi32, #tpu.memory_space<smem>>) -> (i32, i32, i32) {
    %0 = arith.index_cast %arg0 : i32 to index
    %1 = memref.load %arg2[%0] : memref<2xi32, #tpu.memory_space<smem>>
    %c0_i32 = arith.constant 0 : i32
    %c0_i32_0 = arith.constant 0 : i32
    %c0_i32_1 = arith.constant 0 : i32
    return %1, %c0_i32, %c0_i32_0 : i32, i32, i32
  }
  func.func @transform_2(%arg0: i32, %arg1: i32, %arg2: memref<2xi32, #tpu.memory_space<smem>>) -> (i32, i32, i32) {
    %0 = arith.index_cast %arg0 : i32 to index
    %1 = memref.load %arg2[%0] : memref<2xi32, #tpu.memory_space<smem>>
    %c0_i32 = arith.constant 0 : i32
    %c0_i32_0 = arith.constant 0 : i32
    %c0_i32_1 = arith.constant 0 : i32
    return %1, %c0_i32, %c0_i32_0 : i32, i32, i32
  }
  func.func @transform_3(%arg0: i32, %arg1: i32, %arg2: memref<2xi32, #tpu.memory_space<smem>>) -> (i32, i32, i32) {
    %c0_i32 = arith.constant 0 : i32
    %c0_i32_0 = arith.constant 0 : i32
    return %arg0, %arg1, %c0_i32 : i32, i32, i32
  }
}

</mosaic_0001>

<bundles_post_ra>
// kernel: tpu_custom_call.1
= control target key start
LH: loop header
LB: loop body
LE: loop exit
PB: predicated region body
PF: predicated region fallthrough
CT: control target
= control target key end

     0   :  { %s1348_s0 = inlined_call_operand.hbm [shape: s32[2], index: 0, kind: input, shape index: {}]   ;;  %s1349_s1 = inlined_call_operand.hbm [shape: f32[2,8,16], index: 1, kind: input, shape index: {}]   ;;  %s1350_s2 = inlined_call_operand.hbm [shape: f32[4,16,128], index: 2, kind: input, shape index: {}]   ;;  %s1351_s3 = inlined_call_operand.hbm [shape: f32[4,1,128], index: 3, kind: input, shape index: {}]   ;;  %s1352_s4 = inlined_call_operand.hbm [shape: f32[2,8,128], index: 4, kind: output, shape index: {}]  }
   0x1   :  { %1364 = sst [smem:[#allocation27_spill]] %s1349_s1  ;;  %s675_s17 = scalar_lea.hbm %s1348_s0, 16 }
   0x2   :  { %1365 = sst [smem:[#allocation28_spill]] %s1350_s2  ;;  %p676_p0 = scmp.ne.s32.totalorder %s1348_s0, %s675_s17 }
   0x3   :  { %p679_p1 = scmp.lt.u32.totalorder %s675_s17, %s1348_s0 }
   0x5   :  { %p681_p2 = pnand %p679_p1, %p676_p0 }
   0x7   :  { %684 = shalt.err (!%p681_p2)  }
   0x8   :  { %s917_s22 = smov [#allocation3]  }
   0x9   :  { %10 = dma.hbm_to_smem %s1348_s0, 16, %s917_s22, [#allocation2] }
   0xa   :  { %851 = dma.done.wait [#allocation2], 16 }
   0xb   :  { %852 = vsyncadd [#allocation2], 4294967280 }
   0xc   :  { %12 = sfence }
   0xd   :  { %13 = vsyncpa [#allocation5], 0 }
   0xe   :  { %15 = vsyncpa [#allocation5 + $0x1], 0 }
   0xf   :  { %16 = vsyncpa [#allocation8], 0 }
  0x10   :  { %18 = vsyncpa [#allocation8 + $0x1], 0 }
  0x11   :  { %19 = vsyncpa [#allocation6], 0 }
  0x12   :  { %21 = vsyncpa [#allocation6 + $0x1], 0  ;;  %s964_s25 = smov 0   ;;  %s966_s26 = smov 0  }
  0x13   :  { %s968_s27 = smov 0   ;;  %s970_s28 = smov 0  }
  0x14   :  { %s972_s29 = smov 0   ;;  %s974_s0 = smov 0  }
  0x15   :  { %s976_s30 = smov 0   ;;  %s978_s5 = smov 0  }
  0x16   :  { %s980_s6 = smov 0   ;;  %s982_s7 = smov 0  }
  0x17   :  { %s984_s8 = smov 0   ;;  %s986_s9 = smov 0  }
  0x18 LB: > { %1366 = sst [smem:[#allocation20_spill]] %s891_s0  ;;  %s39_s10 = sadd.s32 1, %s911_s8  ;;  %s915_s9 = sphi %s986_s9, %s27_s9   ;;  %s911_s8 = sphi %s984_s8, %s1406_s8   ;;  %s907_s7 = sphi %s982_s7, %s1405_s7   ;;  %s903_s6 = sphi %s980_s6, %s1404_s6   ;;  %s899_s5 = sphi %s978_s5, %s1413_s5   ;;  %s895_s30 = sphi %s976_s30, %s1412_s30   ;;  %s891_s0 = sphi %s974_s0, %s1402_s0   ;;  %s887_s29 = sphi %s972_s29, %s1411_s29   ;;  %s883_s28 = sphi %s970_s28, %s1410_s28   ;;  %s879_s27 = sphi %s968_s27, %s1409_s27   ;;  %s875_s26 = sphi %s966_s26, %s1408_s26   ;;  %s871_s25 = sphi %s964_s25, %s1407_s25  }
  0x19   : > { %1367 = sst [smem:[#allocation21_spill]] %s903_s6  ;;  %p1354_p3 = scmp.eq.s32.totalorder %s915_s9, 0 }
  0x1a   : > { %1368 = sst [smem:[#allocation22_spill]] %s911_s8  ;;  %p41_p4 = scmp.ge.s32.totalorder %s39_s10, 2 }
  0x1b   : > { %s71_s11 = sld [smem:[#allocation3 + %s911_s8]]  ;;  %s76_s12 = sadd.s32 1, %s891_s0 }
  0x1c   : > { %p83_p5 = scmp.ne.s32.totalorder %s891_s0, %s887_s29  ;;  %s1415_s10 = smov (%p41_p4, %s39_s10), 0 }
  0x1d   : > { %1369 = sst [smem:[#allocation23_spill]] %s1415_s10  ;;  %p1353_p9 = scmp.lt.s32.totalorder %s915_s9, 2 }
  0x1e   : > { %p1034_p6 = por %p83_p5, %p1354_p3  ;;  %s72_s14 = sld [smem:[#allocation3 + %s1415_s10]] }
  0x1f   : > { %s188_s15 = sand.u32 1, %s915_s9   ;;  %s190_s16 = sand.u32 1, %s891_s0  }
  0x20   : > { %s513_s17 = sshll.u32 %s190_s16, 4  ;;  %p1049_p10 = pnand %p1353_p9, %p1034_p6 }
  0x21   : > { %s542_s19 = scalar_select %p1034_p6, [#allocation3], [#allocation11] }
  0x22   : > { %s192_s21 = scalar_lea.vmem [#allocation7], %s513_s17  ;;  %p517_p12 = scmp.ge.s32.totalorder %s915_s9, 1 }
  0x23   : > { %s200_s22 = sshll.u32 %s192_s21, 4  ;;  %s1417_s19 = smov (!%p1353_p9, %s542_s19), [#allocation13]  ;;  %s1055_s22 = int_to_ptr.vmem [resolvable:$true] %s200_s22 }
  0x24   : > { %s73_s20 = ssub.s32 %s71_s11, %s72_s14  ;;  %p226_p13 = scmp.lt.s32.totalorder %s915_s9, 3 }
  0x25   : > { %p74_p11 = scmp.eq.s32.totalorder %s73_s20, 0  ;;  %s1074_s17 = sadd.s32 4294967295, %s915_s9  }
  0x26   : > { %s543_s23 = scalar_select %p1034_p6, %s911_s8, 0 }
  0x27   : > { %s1061_s24 = scalar_select %p74_p11, %s891_s0, %s76_s12  }
  0x28   : > { %s1419_s23 = smov (!%p1353_p9, %s543_s23), 0  ;;  %p1069_p0 = pnand %p517_p12, %p226_p13 }
  0x29   : > { %1372 = sst [smem:[#allocation24_spill]] %s1061_s24  ;;  %s1374_s2 = sld [smem:[#allocation28_spill]] }
  0x2a   : > { %s193_s16 = sld [smem:[%s1417_s19 + %s1419_s23]]  ;;  %s508_s12 = sadd.s32 4294967294, %s915_s9  }
  0x2b   : > { %s1082_s19 = scalar_lea.sflag [#allocation8], %s188_s15  ;;  %p687_p2 = pneg %p1049_p10 }
  0x30   : > { %s527_s14 = sshll.u32 %s193_s16, 8 }
  0x31   : > { %s1079_s21 = scalar_lea.hbm %s1374_s2, %s527_s14  ;;  %s690_s14 = scalar_lea.hbm %s1374_s2, 1024 }
  0x32   : > { %s685_s23 = scalar_lea.hbm %s1079_s21, 256  ;;  %p691_p6 = scmp.lt.u32.totalorder %s1079_s21, %s1374_s2 }
  0x33   : > { %p686_p1 = scmp.ne.s32.totalorder %s1079_s21, %s685_s23  ;;  %p692_p11 = scmp.lt.u32.totalorder %s690_s14, %s685_s23 }
  0x34   : > { %p694_p13 = scmp.lt.u32.totalorder %s685_s23, %s1079_s21 }
  0x35   : > { %p688_p4 = pnand %p687_p2, %p686_p1  ;;  %p693_p12 = por %p692_p11, %p691_p6 }
  0x37   : > { %p689_p5 = pneg %p688_p4  ;;  %p695_p8 = por %p694_p13, %p693_p12 }
  0x39   : > { %p696_p9 = pnand %p695_p8, %p689_p5 }
  0x3b   : > { %699 = shalt.err (!%p696_p9)
}
  0x3c   : > { %s700_s15 = scalar_lea.vmem %s1055_s22, 256  ;;  %s918_s24 = smov [#allocation7]  }
  0x3d   : > { %p701_p1 = scmp.ne.s32.totalorder %s1055_s22, %s700_s15  ;;  %s705_s16 = sshll.u32 %s918_s24, 4  ;;  %s706_s16 = int_to_ptr.vmem [resolvable:$false] %s705_s16 }
  0x3e   : > { %s707_s13 = scalar_lea.vmem %s706_s16, 512  ;;  %p708_p3 = scmp.lt.s32.totalorder %s1055_s22, %s706_s16 }
  0x3f   : > { %p703_p4 = pnand %p701_p1, %p687_p2  ;;  %p709_p6 = scmp.lt.s32.totalorder %s707_s13, %s700_s15 }
  0x41   : > { %p704_p7 = pneg %p703_p4  ;;  %p710_p11 = por %p709_p6, %p708_p3 }
  0x43   : > { %p711_p12 = pnand %p710_p11, %p704_p7 }
  0x45   : > { %714 = shalt.err (!%p711_p12)
}
  0x46   : > { %s919_s23 = smov 128   ;;  %s920_s14 = smov 8  }
  0x47   : > { %561 = dma.hbm_to_vmem [thread:$0]  (!%p1049_p10), %s1079_s21, 256, %s1055_s22, %s1082_s19, %s919_s23, %s919_s23, %s920_s14  }
  0x48   : > { %s43_s20 = ssub.s32 %s911_s8, %s1415_s10  ;;  %s48_s15 = sadd.s32 1, %s903_s6 }
  0x49   : > { %p46_p3 = scmp.eq.s32.totalorder %s43_s20, 0  ;;  %p55_p7 = scmp.ne.s32.totalorder %s903_s6, %s899_s5 }
  0x4a   : > { %p61_p8 = scmp.ne.s32.totalorder %s899_s5, %s895_s30  ;;  %p1357_p9 = scmp.eq.s32.totalorder %s1074_s17, 0 }
  0x4b   : > { %s1119_s24 = scalar_select %p46_p3, %s903_s6, %s48_s15  }
  0x4c   : > { %p1376_p2 = scmp.eq.s32.totalorder %s915_s9, 0  ;;  %p1129_p13 = por %p1357_p9, %p61_p8 }
  0x4d   : > { %1375 = sst [smem:[#allocation25_spill]] %s1119_s24  ;;  %p1379_p10 = scmp.ne.s32.totalorder %s887_s29, %s883_s28 }
  0x4e   : > { %p1123_p5 = por %p1376_p2, %p55_p7  ;;  %p143_p4 = scmp.eq.s32.totalorder %s1074_s17, 1 }
  0x4f   : > { %s1378_s18 = scalar_select %p1129_p13, 1, 0 }
  0x50   : > { %p1138_p1 = por %p1379_p10, %p1357_p9  ;;  %p149_p6 = scmp.eq.s32.totalorder %s508_s12, 1 }
  0x51   : > { %s169_s21 = sand.u32 1, %s903_s6   ;;  %p1146_p11 = por %p143_p4, %p55_p7 }
  0x52   : > { %s1380_s22 = scalar_select %p1138_p1, 1, 0 }
  0x53   : > { %s1381_s13 = scalar_select %p1146_p11, 1, 0 }
  0x54   : > { %p1150_p12 = por %p149_p6, %p61_p8  ;;  %s511_s14 = sshll.u32 %s169_s21, 3 }
  0x55   : > { %s512_s20 = sshll.u32 %s911_s8, 7  ;;  %s1383_s1 = sld [smem:[#allocation27_spill]] }
  0x56   : > { %s1382_s23 = scalar_select %p1150_p12, 1, 0 }
  0x57   : > { %s173_s12 = scalar_lea.vmem [#allocation4], %s511_s14  ;;  %p1384_p3 = scmp.lt.s32.totalorder %s915_s9, 2 }
  0x58   : > { %s181_s24 = sshll.u32 %s173_s12, 4  ;;  %s170_s0 = scalar_lea.sflag [#allocation5], %s169_s21  ;;  %s1160_s24 = int_to_ptr.vmem [resolvable:$true] %s181_s24 }
  0x59   : > { %p1166_p7 = pnand %p1384_p3, %p1123_p5 }
  0x5b   : > { %s1158_s2 = scalar_lea.hbm %s1383_s1, %s512_s20  ;;  %p717_p2 = pneg %p1166_p7 }
  0x5c   : > { %s715_s15 = scalar_lea.hbm %s1158_s2, 128  ;;  %s720_s16 = scalar_lea.hbm %s1383_s1, 256 }
  0x5d   : > { %p716_p8 = scmp.ne.s32.totalorder %s1158_s2, %s715_s15  ;;  %p721_p5 = scmp.lt.u32.totalorder %s1158_s2, %s1383_s1 }
  0x5e   : > { %p722_p6 = scmp.lt.u32.totalorder %s720_s16, %s715_s15  ;;  %p724_p9 = scmp.lt.u32.totalorder %s715_s15, %s1158_s2 }
  0x5f   : > { %p718_p10 = pnand %p717_p2, %p716_p8 }
  0x60   : > { %p723_p3 = por %p722_p6, %p721_p5 }
  0x61   : > { %p719_p4 = pneg %p718_p10 }
  0x62   : > { %p725_p12 = por %p724_p9, %p723_p3 }
  0x64   : > { %p726_p11 = pnand %p725_p12, %p719_p4 }
  0x66   : > { %729 = shalt.err (!%p726_p11)
}
  0x67   : > { %s730_s21 = scalar_lea.vmem %s1160_s24, 128  ;;  %s921_s14 = smov [#allocation4]  }
  0x68   : > { %p731_p8 = scmp.ne.s32.totalorder %s1160_s24, %s730_s21  ;;  %s735_s20 = sshll.u32 %s921_s14, 4  ;;  %s736_s20 = int_to_ptr.vmem [resolvable:$false] %s735_s20 }
  0x69   : > { %s737_s28 = scalar_lea.vmem %s736_s20, 256  ;;  %p738_p13 = scmp.lt.s32.totalorder %s1160_s24, %s736_s20 }
  0x6a   : > { %p733_p10 = pnand %p731_p8, %p717_p2  ;;  %p739_p5 = scmp.lt.s32.totalorder %s737_s28, %s730_s21 }
  0x6c   : > { %p734_p1 = pneg %p733_p10  ;;  %p740_p6 = por %p739_p5, %p738_p13 }
  0x6e   : > { %p741_p9 = pnand %p740_p6, %p734_p1 }
  0x70   : > { %744 = shalt.err (!%p741_p9)
}
  0x71   : > { %556 = dma.hbm_to_vmem [thread:$0]  (!%p1166_p7), %s1158_s2, 128, %s1160_s24, %s170_s0  }
  0x72   : > { %s99_s15 = sld [smem:[#allocation3 + %s911_s8]]  ;;  %p111_p13 = scmp.ne.s32.totalorder %s879_s27, %s875_s26 }
  0x73   : > { %s100_s6 = sld [smem:[#allocation3 + %s1415_s10]]  ;;  %p117_p1 = scmp.ne.s32.totalorder %s875_s26, %s871_s25 }
  0x74   : > { %p1386_p11 = scmp.eq.s32.totalorder %s915_s9, 0  ;;  %p1387_p2 = scmp.eq.s32.totalorder %s1074_s17, 0 }
  0x75   : > { %s104_s14 = sadd.s32 1, %s879_s27  ;;  %s212_s20 = sand.u32 1, %s879_s27  }
  0x76   : > { %p113_p12 = por %p111_p13, %p1386_p11  ;;  %p1205_p4 = por %p117_p1, %p1387_p2 }
  0x77   : > { %p1390_p7 = scmp.lt.s32.totalorder %s915_s9, 2  ;;  %s213_s0 = scalar_lea.vmem [#allocation9], %s212_s20 }
  0x78   : > { %s1388_s16 = scalar_select %p1205_p4, 1, 0 }
  0x79   : > { %s545_s12 = scalar_select %p113_p12, [#allocation3], [#allocation12] }
  0x7a   : > { %s101_s21 = ssub.s32 %s99_s15, %s100_s6  ;;  %p1391_p8 = pmov %p1390_p7 }
  0x7b   : > { %p102_p3 = scmp.eq.s32.totalorder %s101_s21, 0  ;;  %s1421_s12 = smov (!%p1390_p7, %s545_s12), [#allocation14] }
  0x7c   : > { %s546_s28 = scalar_select %p113_p12, %s911_s8, 0 }
  0x7d   : > { %s1213_s1 = scalar_select %p102_p3, %s879_s27, %s104_s14  }
  0x7e   : > { %s1423_s28 = smov (!%p1391_p8, %s546_s28), 0  ;;  %p1392_p10 = pmov %p1390_p7 }
  0x7f   : > { %1389 = sst [smem:[#allocation26_spill]] %s1213_s1  ;;  %s221_s24 = sshll.u32 %s213_s0, 4  ;;  %s1225_s24 = int_to_ptr.vmem [resolvable:$true] %s221_s24 }
  0x80   : > { %p1221_p5 = pnand %p1392_p10, %p113_p12  ;;  %s214_s25 = sld [smem:[%s1421_s12 + %s1423_s28]] }
  0x81   : > { %s750_s12 = scalar_lea.hbm %s1351_s3, 64 }
  0x82   : > { %p747_p9 = pneg %p1221_p5 }
  0x86   : > { %s516_s15 = sshll.u32 %s214_s25, 4 }
  0x87   : > { %s219_s14 = scalar_lea.hbm %s1351_s3, %s516_s15 }
  0x88   : > { %s745_s10 = scalar_lea.hbm %s219_s14, 16  ;;  %p751_p11 = scmp.lt.u32.totalorder %s219_s14, %s1351_s3 }
  0x89   : > { %p746_p6 = scmp.ne.s32.totalorder %s219_s14, %s745_s10  ;;  %p752_p12 = scmp.lt.u32.totalorder %s750_s12, %s745_s10 }
  0x8a   : > { %p754_p3 = scmp.lt.u32.totalorder %s745_s10, %s219_s14 }
  0x8b   : > { %p748_p13 = pnand %p747_p9, %p746_p6  ;;  %p753_p2 = por %p752_p12, %p751_p11 }
  0x8d   : > { %p749_p1 = pneg %p748_p13  ;;  %p755_p7 = por %p754_p3, %p753_p2 }
  0x8f   : > { %p756_p8 = pnand %p755_p7, %p749_p1 }
  0x91   : > { %759 = shalt.err (!%p756_p8)
}
  0x92   : > { %s760_s25 = scalar_lea.vmem %s1225_s24, 16  ;;  %s922_s1 = smov [#allocation9]  }
  0x93   : > { %p761_p10 = scmp.ne.s32.totalorder %s1225_s24, %s760_s25  ;;  %s765_s8 = sshll.u32 %s922_s1, 4  ;;  %s766_s8 = int_to_ptr.vmem [resolvable:$false] %s765_s8 }
  0x94   : > { %s767_s0 = scalar_lea.vmem %s766_s8, 32  ;;  %p768_p4 = scmp.lt.s32.totalorder %s1225_s24, %s766_s8 }
  0x95   : > { %p763_p6 = pnand %p761_p10, %p747_p9  ;;  %p769_p11 = scmp.lt.s32.totalorder %s767_s0, %s760_s25 }
  0x97   : > { %p764_p13 = pneg %p763_p6  ;;  %p770_p12 = por %p769_p11, %p768_p4 }
  0x99   : > { %p771_p2 = pnand %p770_p12, %p764_p13 }
  0x9b   : > { %774 = shalt.err (!%p771_p2)
}
  0x9c   : > { %566 = dma.hbm_to_vmem [thread:$0]  (!%p1221_p5), %s219_s14, 16, %s1225_s24, %s1082_s19  }
  0x9d   : > { %230 = sbr.rel (%p1069_p0) target bundleno = 407 (0x197), region = 32  ;;  %s1254_s10 = sand.u32 (!%p1069_p0), 1, %s899_s5  }
  0x9e   : > { %s518_s15 = sshll.u32 (!%p1069_p0), %s1254_s10, 3  ;;  %s233_s6 = scalar_lea.sflag (!%p1069_p0), [#allocation5], %s1254_s10 }
  0x9f   : > { %s236_s21 = scalar_lea.vmem (!%p1069_p0), [#allocation4], %s518_s15  ;;  %p1394_p4 = scmp.ne.s32.totalorder (!%p1069_p0), %s1378_s18, 0 }
  0xa4   : > { %854 = dma.done.wait (%p1394_p4), %s233_s6, 128  }
  0xa5   : > { %856 = vsyncadd (%p1394_p4), %s233_s6, 4294967168  ;;  %s241_s11 = sand.u32 1, %s1074_s17   ;;  %s243_s19 = sand.u32 1, %s887_s29  }
  0xa6   : > { %s519_s2 = sshll.u32 %s243_s19, 4  ;;  %s242_s24 = scalar_lea.sflag [#allocation8], %s241_s11 }
  0xa7   : > { %s245_s14 = scalar_lea.vmem [#allocation7], %s519_s2  ;;  %p1395_p0 = scmp.ne.s32.totalorder %s1380_s22, 0 }
  0xa9   : > { %858 = dma.done.wait (%p1395_p0), %s242_s24, 256  }
  0xaa   : > { %860 = vsyncadd (%p1395_p0), %s242_s24, 4294967040  ;;  %s252_s12 = sand.u32 1, %s875_s26   ;;  %p1396_p5 = scmp.ne.s32.totalorder %s1388_s16, 0 }
  0xab   : > { %s253_s20 = scalar_lea.vmem [#allocation9], %s252_s12 }
  0xac   : > { %862 = dma.done.wait (%p1396_p5), %s242_s24, 16  }
  0xad   : > { %864 = vsyncadd (%p1396_p5), %s242_s24, 4294967280  ;;  %v923_v0 = vmov 0.0|0.0   ;;  %vm924_vm0 = vmmov 0   ;;  %v925_v1 = vmov 0.0   ;;  %v288_v2 = vld [vmem:[%s245_s14] sm:$0xff]  ;;  %v289_v3 = vld [vmem:[%s245_s14 + $0x8] sm:$0xff] }
  0xae   : > { %538 = vmatprep.subr.bf16.mxu0 %v923_v0  ;;  %535 = vmatprep.mubr.msk.f32.mxu0 %vm924_vm0, %v925_v1  ;;  %v539_v4 = vpack.c.bf16 %v289_v3, %v288_v2  ;;  %v287_v5 = vld [vmem:[%s236_s21] sm:$0xff]  ;;  %vm297_vm1 = vcmask 130048   ;;  %s524_s17 = sshll.u32 %s907_s7, 7  ;;  %s284_s18 = scalar_lea.vmem [#allocation10], %s518_s15 }
  0xaf   : > { %v521_v6 = vld [vmem:[%s253_s20] ss:$0 sm:$0xff]  ;;  %s387_s22 = sshll.u32 %s284_s18, 4  ;;  %s1281_s25 = scalar_lea.hbm %s1352_s4, %s524_s17  ;;  %s1283_s22 = int_to_ptr.vmem [resolvable:$true] %s387_s22 }
  0xb0   : > { %540 = vmatpush3.bf16.msra.mxu0 %v539_v4  ;;  %s373_s1 = scalar_lea.sflag [#allocation6], %s1254_s10  ;;  %s775_s8 = scalar_lea.vmem %s1283_s22, 128 }
  0xb1   : > { %p776_p9 = scmp.ne.s32.totalorder %s1283_s22, %s775_s8  ;;  %p1397_p1 = scmp.ne.s32.totalorder %s1381_s13, 0 }
  0xb2   : > { %s926_s7 = smov [#allocation10]  }
  0xb3   : > { %536 = vmatmul.mubr.msk.f32.vlgmr.msra.gmra.mrb[0].mxu0 %vm297_vm1, %v287_v5  ;;  %p777_p3 = pnand %p776_p9, %p1397_p1  ;;  %s779_s0 = sshll.u32 %s926_s7, 4  ;;  %s780_s0 = int_to_ptr.vmem [resolvable:$false] %s779_s0 }
  0xb4   : > { %s781_s15 = scalar_lea.vmem %s780_s0, 256  ;;  %p782_p8 = scmp.lt.s32.totalorder %s1283_s22, %s780_s0 }
  0xb5   : > { %p778_p7 = pneg %p777_p3  ;;  %p783_p10 = scmp.lt.s32.totalorder %s781_s15, %s775_s8 }
  0xb7   : > { %p784_p6 = por %p783_p10, %p782_p8 }
  0xb9   : > { %p785_p13 = pnand %p784_p6, %p778_p7 }
 0x186   : > { %v367_v7 = vpop.f32.mrb[0].mxu0 }
 0x187   : > { %v368_v8 = vadd.f32 %v521_v6, %v367_v7  ;;  %v537_v9 = vpop.f32.mrb[1].mxu0 }
 0x189   : > { %371 = vst [vmem:[%s284_s18] sm:$0xff] %v368_v8 }
 0x18a   : > { %788 = shalt.err (!%p785_p13)
}
 0x18b   : > { %s789_s10 = scalar_lea.hbm %s1281_s25, 128  ;;  %s793_s11 = scalar_lea.hbm %s1352_s4, 256 }
 0x18c   : > { %p790_p11 = scmp.ne.s32.totalorder %s1281_s25, %s789_s10  ;;  %p794_p4 = scmp.lt.u32.totalorder %s1281_s25, %s1352_s4 }
 0x18d   : > { %p795_p0 = scmp.lt.u32.totalorder %s793_s11, %s789_s10  ;;  %p797_p9 = scmp.lt.u32.totalorder %s789_s10, %s1281_s25 }
 0x18e   : > { %p791_p12 = pnand %p790_p11, %p1397_p1 }
 0x18f   : > { %p796_p5 = por %p795_p0, %p794_p4 }
 0x190   : > { %p792_p2 = pneg %p791_p12 }
 0x191   : > { %p798_p3 = por %p797_p9, %p796_p5 }
 0x193   : > { %p799_p7 = pnand %p798_p3, %p792_p2 }
 0x195   : > { %802 = shalt.err (!%p799_p7)
}
 0x196   : > { %551 = dma.vmem_to_hbm [thread:$0]  (%p1397_p1), %s1283_s22, 128, %s1281_s25, %s373_s1  }
 0x197 PF: > { %s399_s24 = sand.u32 1, %s895_s30   ;;  %p1398_p8 = scmp.ne.s32.totalorder %s1382_s23, 0 }
 0x198   : > { %p1399_p10 = scmp.ge.s32.totalorder %s915_s9, 2  ;;  %s400_s14 = scalar_lea.sflag [#allocation6], %s399_s24 }
 0x19a   : > { %p568_p6 = pnand %p1399_p10, %p1398_p8 }
 0x19c   : > { %866 = dma.done.wait (!%p568_p6), %s400_s14, 128  }
 0x19d   : > { %868 = vsyncadd (!%p568_p6), %s400_s14, 4294967168  ;;  %s27_s9 = sadd.s32 1, %s915_s9   ;;  %s1400_s13 = sld [smem:[#allocation26_spill]] }
 0x19e   : > { %p24_p13 = scmp.ge.s32.totalorder %s27_s9, 4   ;;  %s1401_s12 = sld [smem:[#allocation20_spill]] }
 0x19f   : > { %s1402_s0 = sld [smem:[#allocation24_spill]]  ;;  %s1403_s20 = sld [smem:[#allocation21_spill]] }
 0x1a0   : > { %s1404_s6 = sld [smem:[#allocation25_spill]]  ;;  %s1405_s7 = sld [smem:[#allocation22_spill]] }
 0x1a1   : > { %s1406_s8 = sld [smem:[#allocation23_spill]]  ;;  %s1407_s25 = smov %s875_s26 }
 0x1a2   : > { %s1408_s26 = smov %s879_s27  ;;  %s1410_s28 = smov %s887_s29 }
 0x1a3   : > { %s1409_s27 = smov %s1400_s13  ;;  %s1412_s30 = smov %s899_s5 }
 0x1a4   : > { %s1411_s29 = smov %s1401_s12  ;;  %26 = sbr.rel (!%p24_p13) target bundleno = 24 (0x18), region = 101 }
 0x1a5   : > { %s1413_s5 = smov %s1403_s20 }
 0x1ab   :  { %405 = vsyncpa [#allocation5], 1 }
 0x1ac   :  { %407 = vsyncpa [#allocation5 + $0x1], 1 }
 0x1ad   :  { %408 = vsyncpa [#allocation8], 1 }
 0x1ae   :  { %410 = vsyncpa [#allocation8 + $0x1], 1 }
 0x1af   :  { %411 = vsyncpa [#allocation6], 1 }
 0x1b0   :  { %413 = vsyncpa [#allocation6 + $0x1], 1 }

</bundles_post_ra>
